<compile_context>
chip_gen: v7x
topology: tpu7x:2x2x1
jax: 0.10.0
libtpu: 0.0.40
codegen_flags: <defaults>
</compile_context>

<pallas_src>
import jax
import jax.numpy as jnp
from jax import lax
from jax.experimental import pallas as pl
from jax.experimental.pallas import tpu as pltpu


def _round_up(x, m):
    return ((x + m - 1) // m) * m


def reward_model_kernel(sx_ref, ax_ref, w1_ref, b1_ref, w2_ref, b2_ref,
                        w3s_ref, w3a_ref, b3_ref, w4t_ref, b4_ref, out_ref):
    cdt = w1_ref.dtype  # MXU operand dtype (bf16 or f32); accumulation is f32.

    # state_processor: Linear(state_dim -> H) -> (Dropout(0.2)=identity) -> ReLU
    s = jnp.dot(sx_ref[...].astype(cdt), w1_ref[...],
                preferred_element_type=jnp.float32)
    s = jnp.maximum(s + b1_ref[...], 0.0)                       # (TB, H), f32

    # action_processor: Linear(action_dim -> H) -> ReLU
    a = jnp.dot(ax_ref[...].astype(cdt), w2_ref[...],
                preferred_element_type=jnp.float32)
    a = jnp.maximum(a + b2_ref[...], 0.0)                       # (TB, H), f32

    # output_layer[0..2]: Linear(2H -> 8) on the virtual concat([s, a], 1),
    # realized as a split-weight sum (no concat, no block-diag weight).
    h = (jnp.dot(s.astype(cdt), w3s_ref[...], preferred_element_type=jnp.float32)
         + jnp.dot(a.astype(cdt), w3a_ref[...], preferred_element_type=jnp.float32))
    h = jnp.maximum(h + b3_ref[...], 0.0)                       # (TB, 8), f32

    # output_layer[3]: Linear(8 -> out_dim), computed transposed so the HBM
    # store is lane-dense: out = W4^T @ h^T -> (out_pad, TB); store out_dim rows.
    out_full = lax.dot_general(
        w4t_ref[...], h.astype(cdt),
        dimension_numbers=(((1,), (1,)), ((), ())),
        preferred_element_type=jnp.float32)                     # (out_pad, TB)
    out_dim = out_ref.shape[0]
    out_ref[...] = out_full[:out_dim, :] + b4_ref[...]          # (out_dim, TB)


def reward_model_forward(sx, ax, params, *, compute_dtype=jnp.float32, tb=4096):
    """sx: (B, state_dim), ax: (B, action_dim) -> (B*output_dim, 1).

    compute_dtype: MXU operand dtype (f32 reproduces PyTorch f32 numerics;
    bf16 halves MXU operand width — inputs are still streamed as f32 and cast
    in-kernel, so there is no extra HBM round trip).  tb: requested batch
    tile; actual tile is a multiple of 128, chosen so the grid has >= 2 steps
    whenever B > 128 (v7x megacore) and padding stays small.
    """
    (w1, b1, w2, b2, w3, b3, w4, b4) = params
    B = sx.shape[0]
    state_dim = w1.shape[0]
    action_dim = w2.shape[0]
    hidden = w1.shape[1]
    mid = w3.shape[1]            # = 8 in the module
    out_dim = w4.shape[1]

    # Flatten like torch .view(B, -1); stream raw f32 (cast happens in-kernel).
    st = sx.reshape(B, -1).astype(jnp.float32)
    ac = ax.reshape(B, -1).astype(jnp.float32)

    # Batch tile selection: large enough to amortize per-grid-step overhead,
    # >= 2 grid steps when B > 128 so both v7x TensorCores get work.
    if B <= 128:
        tb = 128
    else:
        n_steps = max(2, -(-B // max(int(tb), 128)))
        tb = _round_up(-(-B // n_steps), 128)
    bp = _round_up(B, tb)
    if bp != B:
        st = jnp.pad(st, ((0, bp - B), (0, 0)))
        ac = jnp.pad(ac, ((0, bp - B), (0, 0)))

    # Resident weights / biases (cast once in the wrapper; tiny).
    w1c = w1.astype(compute_dtype)
    w2c = w2.astype(compute_dtype)
    w3s = w3[:hidden].astype(compute_dtype)      # rows multiplying s
    w3a = w3[hidden:].astype(compute_dtype)      # rows multiplying a
    b1r = b1.reshape(1, -1).astype(jnp.float32)
    b2r = b2.reshape(1, -1).astype(jnp.float32)
    b3r = b3.reshape(1, -1).astype(jnp.float32)

    # Head weight transposed + sublane-padded (resident only; HBM output is
    # NOT padded — only the first out_dim rows of the MXU result are stored).
    out_pad = _round_up(max(out_dim, 8), 8)
    w4t = jnp.zeros((out_pad, mid), compute_dtype)
    w4t = w4t.at[:out_dim].set(w4.T.astype(compute_dtype))
    b4c = b4.reshape(out_dim, 1).astype(jnp.float32)

    grid = (bp // tb,)
    out_t = pl.pallas_call(
        reward_model_kernel,
        out_shape=jax.ShapeDtypeStruct((out_dim, bp), jnp.float32),
        grid=grid,
        in_specs=[
            pl.BlockSpec((tb, state_dim), lambda i: (i, 0)),    # sx (streamed)
            pl.BlockSpec((tb, action_dim), lambda i: (i, 0)),   # ax (streamed)
            pl.BlockSpec((state_dim, hidden), lambda i: (0, 0)),  # W1 (resident)
            pl.BlockSpec((1, hidden), lambda i: (0, 0)),          # b1
            pl.BlockSpec((action_dim, hidden), lambda i: (0, 0)), # W2
            pl.BlockSpec((1, hidden), lambda i: (0, 0)),          # b2
            pl.BlockSpec((hidden, mid), lambda i: (0, 0)),        # W3_s
            pl.BlockSpec((hidden, mid), lambda i: (0, 0)),        # W3_a
            pl.BlockSpec((1, mid), lambda i: (0, 0)),             # b3
            pl.BlockSpec((out_pad, mid), lambda i: (0, 0)),       # W4^T (padded)
            pl.BlockSpec((out_dim, 1), lambda i: (0, 0)),         # b4
        ],
        out_specs=pl.BlockSpec((out_dim, tb), lambda i: (0, i)),
        compiler_params=pltpu.CompilerParams(
            dimension_semantics=("parallel",)),
    )(st, ac, w1c, b1r, w2c, b2r, w3s, w3a, b3r, w4t, b4c)

    # (out_dim, B) -> (B, out_dim) -> flatten: matches torch .reshape(-1, 1).
    return out_t[:, :B].T.reshape(-1, 1)


def init_params(key, state_dim, action_dim, hidden_dim, output_dim):
    """Deterministic synthetic init (uniform, PyTorch-Linear-style bounds)."""
    ks = jax.random.split(key, 8)

    def lin(kw, kb, fan_in, fan_out):
        bound = 1.0 / jnp.sqrt(jnp.float32(fan_in))
        w = jax.random.uniform(kw, (fan_in, fan_out), jnp.float32, -bound, bound)
        b = jax.random.uniform(kb, (fan_out,), jnp.float32, -bound, bound)
        return w, b

    w1, b1 = lin(ks[0], ks[1], state_dim, hidden_dim)
    w2, b2 = lin(ks[2], ks[3], action_dim, hidden_dim)
    w3, b3 = lin(ks[4], ks[5], hidden_dim + hidden_dim, 8)
    w4, b4 = lin(ks[6], ks[7], 8, output_dim)
    return (w1, b1, w2, b2, w3, b3, w4, b4)


def reference_forward(sx, ax, params):
    """Pure-JAX f32 reference mirroring the PyTorch module."""
    (w1, b1, w2, b2, w3, b3, w4, b4) = params
    B = sx.shape[0]
    st = sx.reshape(B, -1)
    ac = ax.reshape(B, -1)
    s = jnp.maximum(st @ w1 + b1, 0.0)
    a = jnp.maximum(ac @ w2 + b2, 0.0)
    cmb = jnp.concatenate([s, a], axis=1)
    h = jnp.maximum(cmb @ w3 + b3, 0.0)
    return (h @ w4 + b4).reshape(-1, 1)


if __name__ == "__main__":
    # Small shapes consistent with the module (module uses batch_size=128).
    # NOTE: B=128 is a degenerate single-grid-step case; tune tb at the
    # production rollout batch size before drawing throughput conclusions.
    B = 128
    state_dim = 16
    action_dim = 4
    hidden_dim = 32
    output_dim = 1

    key = jax.random.PRNGKey(0)
    k_sx, k_ax, k_p = jax.random.split(key, 3)

    sx = jax.random.normal(k_sx, (B, state_dim), jnp.float32)
    ax = jax.random.normal(k_ax, (B, action_dim), jnp.float32)
    params = init_params(k_p, state_dim, action_dim, hidden_dim, output_dim)

    ref = reference_forward(sx, ax, params)

    # f32 path: matches the PyTorch float32 numerics.
    out_f32 = jax.block_until_ready(
        reward_model_forward(sx, ax, params, compute_dtype=jnp.float32))
    assert out_f32.shape == (B * output_dim, 1), out_f32.shape
    assert jnp.allclose(out_f32, ref, atol=1e-4, rtol=1e-4), (
        float(jnp.max(jnp.abs(out_f32 - ref))))

    # bf16 operand path: the throughput configuration (f32 accumulation).
    out_bf16 = jax.block_until_ready(
        reward_model_forward(sx, ax, params, compute_dtype=jnp.bfloat16))
    assert out_bf16.shape == (B * output_dim, 1), out_bf16.shape
    assert jnp.allclose(out_bf16, ref, atol=5e-2, rtol=5e-2), (
        float(jnp.max(jnp.abs(out_bf16 - ref))))

    # Multi-tile path (pads B, grid >= 2 steps) to exercise the pipeline.
    B2 = 640
    sx2 = jax.random.normal(k_sx, (B2, state_dim), jnp.float32)
    ax2 = jax.random.normal(k_ax, (B2, action_dim), jnp.float32)
    ref2 = reference_forward(sx2, ax2, params)
    out2 = jax.block_until_ready(
        reward_model_forward(sx2, ax2, params, compute_dtype=jnp.float32))
    assert out2.shape == (B2 * output_dim, 1), out2.shape
    assert jnp.allclose(out2, ref2, atol=1e-4, rtol=1e-4), (
        float(jnp.max(jnp.abs(out2 - ref2))))

    print("KERNEL_OK")
</pallas_src>

<mosaic_0001>
module attributes {stable_mosaic.version = 11 : i64} {
  func.func @reward_model_kernel(%arg0: i32, %arg1: memref<128x16xf32, #tpu.memory_space<vmem>>, %arg2: memref<128x4xf32, #tpu.memory_space<vmem>>, %arg3: memref<16x32xf32, #tpu.memory_space<vmem>>, %arg4: memref<1x32xf32, #tpu.memory_space<vmem>>, %arg5: memref<4x32xf32, #tpu.memory_space<vmem>>, %arg6: memref<1x32xf32, #tpu.memory_space<vmem>>, %arg7: memref<32x8xf32, #tpu.memory_space<vmem>>, %arg8: memref<32x8xf32, #tpu.memory_space<vmem>>, %arg9: memref<1x8xf32, #tpu.memory_space<vmem>>, %arg10: memref<8x8xf32, #tpu.memory_space<vmem>>, %arg11: memref<1x1xf32, #tpu.memory_space<vmem>>, %arg12: memref<1x128xf32, #tpu.memory_space<vmem>>) attributes {dimension_semantics = [#tpu.dimension_semantics<parallel>], iteration_bounds = array<i64: 1>, scalar_prefetch = 0 : i64, scratch_operands = 0 : i64, tpu.core_type = #tpu.core_type<tc>, window_params = [{transform_indices = @transform_0, window_bounds = array<i64: 128, 16>}, {transform_indices = @transform_1, window_bounds = array<i64: 128, 4>}, {pipeline_mode = #tpu.pipeline_mode<synchronous>, transform_indices = @transform_2, window_bounds = array<i64: 16, 32>}, {pipeline_mode = #tpu.pipeline_mode<synchronous>, transform_indices = @transform_3, window_bounds = array<i64: 1, 32>}, {pipeline_mode = #tpu.pipeline_mode<synchronous>, transform_indices = @transform_4, window_bounds = array<i64: 4, 32>}, {pipeline_mode = #tpu.pipeline_mode<synchronous>, transform_indices = @transform_5, window_bounds = array<i64: 1, 32>}, {pipeline_mode = #tpu.pipeline_mode<synchronous>, transform_indices = @transform_6, window_bounds = array<i64: 32, 8>}, {pipeline_mode = #tpu.pipeline_mode<synchronous>, transform_indices = @transform_7, window_bounds = array<i64: 32, 8>}, {pipeline_mode = #tpu.pipeline_mode<synchronous>, transform_indices = @transform_8, window_bounds = array<i64: 1, 8>}, {pipeline_mode = #tpu.pipeline_mode<synchronous>, transform_indices = @transform_9, window_bounds = array<i64: 8, 8>}, {pipeline_mode = #tpu.pipeline_mode<synchronous>, transform_indices = @transform_10, window_bounds = array<i64: 1, 1>}, {transform_indices = @transform_11, window_bounds = array<i64: 1, 128>}]} {
    %c0 = arith.constant 0 : index
    %c0_0 = arith.constant 0 : index
    %0 = vector.load %arg1[%c0, %c0_0] : memref<128x16xf32, #tpu.memory_space<vmem>>, vector<128x16xf32>
    %c0_1 = arith.constant 0 : index
    %c0_2 = arith.constant 0 : index
    %1 = vector.load %arg3[%c0_1, %c0_2] : memref<16x32xf32, #tpu.memory_space<vmem>>, vector<16x32xf32>
    %cst = arith.constant dense<0.000000e+00> : vector<128x32xf32>
    %2 = tpu.matmul %0, %1, %cst {dimension_numbers = #tpu.dot_dimension_numbers<[1], [0], [0], [1], [0, 0, 1, 1], [], []>} : vector<128x16xf32>, vector<16x32xf32>, vector<128x32xf32> -> vector<128x32xf32>
    %c0_3 = arith.constant 0 : index
    %c0_4 = arith.constant 0 : index
    %3 = vector.load %arg4[%c0_3, %c0_4] : memref<1x32xf32, #tpu.memory_space<vmem>>, vector<1x32xf32>
    %4 = vector.broadcast %3 : vector<1x32xf32> to vector<128x32xf32>
    %5 = arith.addf %2, %4 : vector<128x32xf32>
    %cst_5 = arith.constant 0.000000e+00 : f32
    %6 = vector.broadcast %cst_5 : f32 to vector<128x32xf32>
    %7 = arith.maximumf %5, %6 : vector<128x32xf32>
    %c0_6 = arith.constant 0 : index
    %c0_7 = arith.constant 0 : index
    %8 = vector.load %arg2[%c0_6, %c0_7] : memref<128x4xf32, #tpu.memory_space<vmem>>, vector<128x4xf32>
    %c0_8 = arith.constant 0 : index
    %c0_9 = arith.constant 0 : index
    %9 = vector.load %arg5[%c0_8, %c0_9] : memref<4x32xf32, #tpu.memory_space<vmem>>, vector<4x32xf32>
    %cst_10 = arith.constant dense<0.000000e+00> : vector<128x32xf32>
    %10 = tpu.matmul %8, %9, %cst_10 {dimension_numbers = #tpu.dot_dimension_numbers<[1], [0], [0], [1], [0, 0, 1, 1], [], []>} : vector<128x4xf32>, vector<4x32xf32>, vector<128x32xf32> -> vector<128x32xf32>
    %c0_11 = arith.constant 0 : index
    %c0_12 = arith.constant 0 : index
    %11 = vector.load %arg6[%c0_11, %c0_12] : memref<1x32xf32, #tpu.memory_space<vmem>>, vector<1x32xf32>
    %12 = vector.broadcast %11 : vector<1x32xf32> to vector<128x32xf32>
    %13 = arith.addf %10, %12 : vector<128x32xf32>
    %cst_13 = arith.constant 0.000000e+00 : f32
    %14 = vector.broadcast %cst_13 : f32 to vector<128x32xf32>
    %15 = arith.maximumf %13, %14 : vector<128x32xf32>
    %c0_14 = arith.constant 0 : index
    %c0_15 = arith.constant 0 : index
    %16 = vector.load %arg7[%c0_14, %c0_15] : memref<32x8xf32, #tpu.memory_space<vmem>>, vector<32x8xf32>
    %cst_16 = arith.constant dense<0.000000e+00> : vector<128x8xf32>
    %17 = tpu.matmul %7, %16, %cst_16 {dimension_numbers = #tpu.dot_dimension_numbers<[1], [0], [0], [1], [0, 0, 1, 1], [], []>} : vector<128x32xf32>, vector<32x8xf32>, vector<128x8xf32> -> vector<128x8xf32>
    %c0_17 = arith.constant 0 : index
    %c0_18 = arith.constant 0 : index
    %18 = vector.load %arg8[%c0_17, %c0_18] : memref<32x8xf32, #tpu.memory_space<vmem>>, vector<32x8xf32>
    %cst_19 = arith.constant dense<0.000000e+00> : vector<128x8xf32>
    %19 = tpu.matmul %15, %18, %cst_19 {dimension_numbers = #tpu.dot_dimension_numbers<[1], [0], [0], [1], [0, 0, 1, 1], [], []>} : vector<128x32xf32>, vector<32x8xf32>, vector<128x8xf32> -> vector<128x8xf32>
    %20 = arith.addf %17, %19 : vector<128x8xf32>
    %c0_20 = arith.constant 0 : index
    %c0_21 = arith.constant 0 : index
    %21 = vector.load %arg9[%c0_20, %c0_21] : memref<1x8xf32, #tpu.memory_space<vmem>>, vector<1x8xf32>
    %22 = vector.broadcast %21 : vector<1x8xf32> to vector<128x8xf32>
    %23 = arith.addf %20, %22 : vector<128x8xf32>
    %cst_22 = arith.constant 0.000000e+00 : f32
    %24 = vector.broadcast %cst_22 : f32 to vector<128x8xf32>
    %25 = arith.maximumf %23, %24 : vector<128x8xf32>
    %c0_23 = arith.constant 0 : index
    %c0_24 = arith.constant 0 : index
    %26 = vector.load %arg10[%c0_23, %c0_24] : memref<8x8xf32, #tpu.memory_space<vmem>>, vector<8x8xf32>
    %cst_25 = arith.constant dense<0.000000e+00> : vector<8x128xf32>
    %27 = tpu.matmul %26, %25, %cst_25 {dimension_numbers = #tpu.dot_dimension_numbers<[1], [1], [0], [0], [0, 0, 1, 0], [], []>} : vector<8x8xf32>, vector<128x8xf32>, vector<8x128xf32> -> vector<8x128xf32>
    %28 = vector.extract_strided_slice %27 {offsets = [0, 0], sizes = [1, 128], strides = [1, 1]} : vector<8x128xf32> to vector<1x128xf32>
    %c0_26 = arith.constant 0 : index
    %c0_27 = arith.constant 0 : index
    %29 = vector.load %arg11[%c0_26, %c0_27] : memref<1x1xf32, #tpu.memory_space<vmem>>, vector<1x1xf32>
    %30 = vector.broadcast %29 : vector<1x1xf32> to vector<1x128xf32>
    %31 = arith.addf %28, %30 : vector<1x128xf32>
    %c0_28 = arith.constant 0 : index
    %c0_29 = arith.constant 0 : index
    %32 = vector.load %arg12[%c0_28, %c0_29] : memref<1x128xf32, #tpu.memory_space<vmem>>, vector<1x128xf32>
    tpu.vector_store %arg12[%c0_28, %c0_29], %31 {strides = array<i32>} : memref<1x128xf32, #tpu.memory_space<vmem>>, vector<1x128xf32>,
    return
  }
  func.func @transform_0(%arg0: i32) -> (i32, i32) {
    %c0_i32 = arith.constant 0 : i32
    %c0_i32_0 = arith.constant 0 : i32
    return %arg0, %c0_i32 : i32, i32
  }
  func.func @transform_1(%arg0: i32) -> (i32, i32) {
    %c0_i32 = arith.constant 0 : i32
    %c0_i32_0 = arith.constant 0 : i32
    return %arg0, %c0_i32 : i32, i32
  }
  func.func @transform_2(%arg0: i32) -> (i32, i32) {
    %c0_i32 = arith.constant 0 : i32
    %c0_i32_0 = arith.constant 0 : i32
    %c0_i32_1 = arith.constant 0 : i32
    return %c0_i32, %c0_i32_0 : i32, i32
  }
  func.func @transform_3(%arg0: i32) -> (i32, i32) {
    %c0_i32 = arith.constant 0 : i32
    %c0_i32_0 = arith.constant 0 : i32
    %c0_i32_1 = arith.constant 0 : i32
    return %c0_i32, %c0_i32_0 : i32, i32
  }
  func.func @transform_4(%arg0: i32) -> (i32, i32) {
    %c0_i32 = arith.constant 0 : i32
    %c0_i32_0 = arith.constant 0 : i32
    %c0_i32_1 = arith.constant 0 : i32
    return %c0_i32, %c0_i32_0 : i32, i32
  }
  func.func @transform_5(%arg0: i32) -> (i32, i32) {
    %c0_i32 = arith.constant 0 : i32
    %c0_i32_0 = arith.constant 0 : i32
    %c0_i32_1 = arith.constant 0 : i32
    return %c0_i32, %c0_i32_0 : i32, i32
  }
  func.func @transform_6(%arg0: i32) -> (i32, i32) {
    %c0_i32 = arith.constant 0 : i32
    %c0_i32_0 = arith.constant 0 : i32
    %c0_i32_1 = arith.constant 0 : i32
    return %c0_i32, %c0_i32_0 : i32, i32
  }
  func.func @transform_7(%arg0: i32) -> (i32, i32) {
    %c0_i32 = arith.constant 0 : i32
    %c0_i32_0 = arith.constant 0 : i32
    %c0_i32_1 = arith.constant 0 : i32
    return %c0_i32, %c0_i32_0 : i32, i32
  }
  func.func @transform_8(%arg0: i32) -> (i32, i32) {
    %c0_i32 = arith.constant 0 : i32
    %c0_i32_0 = arith.constant 0 : i32
    %c0_i32_1 = arith.constant 0 : i32
    return %c0_i32, %c0_i32_0 : i32, i32
  }
  func.func @transform_9(%arg0: i32) -> (i32, i32) {
    %c0_i32 = arith.constant 0 : i32
    %c0_i32_0 = arith.constant 0 : i32
    %c0_i32_1 = arith.constant 0 : i32
    return %c0_i32, %c0_i32_0 : i32, i32
  }
  func.func @transform_10(%arg0: i32) -> (i32, i32) {
    %c0_i32 = arith.constant 0 : i32
    %c0_i32_0 = arith.constant 0 : i32
    %c0_i32_1 = arith.constant 0 : i32
    return %c0_i32, %c0_i32_0 : i32, i32
  }
  func.func @transform_11(%arg0: i32) -> (i32, i32) {
    %c0_i32 = arith.constant 0 : i32
    %c0_i32_0 = arith.constant 0 : i32
    return %c0_i32, %arg0 : i32, i32
  }
}

</mosaic_0001>

<bundles_post_ra>
// kernel: tpu_custom_call.1
= control target key start
LH: loop header
LB: loop body
LE: loop exit
PB: predicated region body
PF: predicated region fallthrough
CT: control target
= control target key end

     0   :  { %s1877_s0 = inlined_call_operand.vmem [shape: f32[128,16], index: 0, kind: input, shape index: {}]   ;;  %s1878_s1 = inlined_call_operand.vmem [shape: f32[128,4], index: 1, kind: input, shape index: {}]   ;;  %s1879_s2 = inlined_call_operand.vmem [shape: f32[16,32], index: 2, kind: input, shape index: {}]   ;;  %s1880_s3 = inlined_call_operand.vmem [shape: f32[1,32], index: 3, kind: input, shape index: {}]   ;;  %s1881_s4 = inlined_call_operand.vmem [shape: f32[4,32], index: 4, kind: input, shape index: {}]   ;;  %s1882_s5 = inlined_call_operand.vmem [shape: f32[1,32], index: 5, kind: input, shape index: {}]   ;;  %s1883_s6 = inlined_call_operand.vmem [shape: f32[32,8], index: 6, kind: input, shape index: {}]   ;;  %s1884_s7 = inlined_call_operand.vmem [shape: f32[32,8], index: 7, kind: input, shape index: {}]   ;;  %s1885_s8 = inlined_call_operand.vmem [shape: f32[1,8], index: 8, kind: input, shape index: {}]   ;;  %s1886_s9 = inlined_call_operand.vmem [shape: f32[8,8], index: 9, kind: input, shape index: {}]   ;;  %s1887_s10 = inlined_call_operand.<no memory space> [shape: f32[1,1], index: 10, kind: input, shape index: {}]   ;;  %s1888_s11 = inlined_call_operand.hbm [shape: f32[1,128], index: 11, kind: output, shape index: {}]  }
   0x1   :  { %v16_v0 = vstv %s1887_s10 }
   0x2   :  { %17 = vst [vmem:[#allocation2] sm:$0x1] %v16_v0 }
   0x3   :  { %v292_v1 = vld [vmem:[%s1881_s4] sm:$0xf]  ;;  %vm349_vm0 = vcmask 1043456   ;;  %vm300_vm1 = vcmask 31744   ;;  %v277_v3 = vld [vmem:[%s1878_s1 + $0x8] sm:$0xff]  ;;  %v278_v4 = vld [vmem:[%s1878_s1 + $0x10] sm:$0xff] }
   0x4   :  { %v276_v2 = vld [vmem:[%s1878_s1] sm:$0xff]  ;;  %1302 = vmatprep.subr.msk.mxu1 %vm349_vm0, %v292_v1  ;;  %v279_v5 = vld [vmem:[%s1878_s1 + $0x18] sm:$0xff]  ;;  %vm66_vm2 = vcmask 130048   ;;  %v58_v8 = vld [vmem:[%s1879_s2 + $0x8] sm:$0xff] }
   0x5   :  { %1304 = vmatprep.mubr.msk.f32.mxu1 %vm300_vm1, %v276_v2  ;;  %1303 = vmatpush3.msk.msra.mxu1 %vm349_vm0, %v292_v1  ;;  %v280_v6 = vld [vmem:[%s1878_s1 + $0x20] sm:$0xff]  ;;  %v281_v11 = vld [vmem:[%s1878_s1 + $0x28] sm:$0xff]  ;;  %v282_v12 = vld [vmem:[%s1878_s1 + $0x30] sm:$0xff] }
   0x6   :  { %1305 = vmatmul.mubr.msk.f32.vlgmr.msra.gmra.mrb[0].mxu1 %vm300_vm1, %v277_v3  ;;  %v57_v7 = vld [vmem:[%s1879_s2] sm:$0xff]  ;;  %v42_v13 = vld [vmem:[%s1877_s0 + $0x8] sm:$0xff]  ;;  %v43_v14 = vld [vmem:[%s1877_s0 + $0x10] sm:$0xff] }
   0x7   :  { %1307 = vmatprep.mubr.msk.f32.mxu1 %vm300_vm1, %v278_v4  ;;  %v1427_v9 = vpack.c.bf16 %v58_v8, %v57_v7  ;;  %v41_v10 = vld [vmem:[%s1877_s0] sm:$0xff]  ;;  %v283_v15 = vld [vmem:[%s1878_s1 + $0x38] sm:$0xff]  ;;  %v519_v17 = vld [vmem:[%s1884_s7 + $0x8] sm:$0xff] }
   0x8   :  { %1278 = vmatprep.mubr.msk.f32.mxu0 %vm66_vm2, %v41_v10  ;;  %v518_v16 = vld [vmem:[%s1884_s7] sm:$0xff]  ;;  %v520_v18 = vld [vmem:[%s1884_s7 + $0x10] sm:$0xff]  ;;  %v521_v19 = vld [vmem:[%s1884_s7 + $0x18] sm:$0xff] }
   0x9   :  { %1428 = vmatprep.subr.bf16.mxu0 %v1427_v9  ;;  %v284_v20 = vld [vmem:[%s1878_s1 + $0x40] sm:$0xff]  ;;  %v44_v21 = vld [vmem:[%s1877_s0 + $0x18] sm:$0xff]  ;;  %v1431_v22 = vpack.c.bf16 %v519_v17, %v518_v16 }
   0xa   :  { %1308 = vmatmul.mubr.msk.f32.gmra.mrb[2].mxu1 %vm300_vm1, %v279_v5  ;;  %1430 = vmatpush3.bf16.msra.mxu0 %v1427_v9 }
   0xb   :  { %1310 = vmatprep.mubr.msk.f32.mxu1 %vm300_vm1, %v280_v6 }
   0xd   :  { %1279 = vmatmul.mubr.msk.f32.vlgmr.msra.gmra.mrb[0].mxu0 %vm66_vm2, %v42_v13 }
   0xe   :  { %1311 = vmatmul.mubr.msk.f32.gmra.mrb[4].mxu1 %vm300_vm1, %v281_v11  ;;  %1281 = vmatprep.mubr.msk.f32.mxu0 %vm66_vm2, %v43_v14 }
   0xf   :  { %1313 = vmatprep.mubr.msk.f32.mxu1 %vm300_vm1, %v282_v12 }
  0x10   :  { %18 = vsyncpa [#allocation4], 0  ;;  %v45_v23 = vld [vmem:[%s1877_s0 + $0x20] sm:$0xff]  ;;  %v1435_v24 = vpack.c.bf16 %v521_v19, %v520_v18  ;;  %1432 = vmatprep.subr.bf16.mxu1 %v1431_v22  ;;  %v285_v25 = vld [vmem:[%s1878_s1 + $0x48] sm:$0xff]  ;;  %vm522_vm3 = vcmask 261120   ;;  %vm1526_vm4 = vmmov 0  }
  0x11   :  { %1282 = vmatmul.mubr.msk.f32.gmra.mrb[2].mxu0 %vm66_vm2, %v44_v21  ;;  %v286_v26 = vld [vmem:[%s1878_s1 + $0x50] sm:$0xff]  ;;  %v46_v27 = vld [vmem:[%s1877_s0 + $0x28] sm:$0xff]  ;;  %1434 = vmatpush3.bf16.msra.mxu1 %v1431_v22  ;;  %v287_v29 = vld [vmem:[%s1878_s1 + $0x58] sm:$0xff]  ;;  %vm949_vm5 = vcmask 64512   ;;  %s1529_s7 = smov [#allocation3]  }
  0x12   :  { %1314 = vmatmul.mubr.msk.f32.gmra.mrb[6].mxu1 %vm300_vm1, %v283_v15  ;;  %1284 = vmatprep.mubr.msk.f32.mxu0 %vm66_vm2, %v45_v23  ;;  %v47_v28 = vld [vmem:[%s1877_s0 + $0x30] sm:$0xff]  ;;  %v288_v30 = vld [vmem:[%s1878_s1 + $0x60] sm:$0xff]  ;;  %v48_v31 = vld [vmem:[%s1877_s0 + $0x38] sm:$0xff]  ;;  %s1089_s18 = sshll.u32 %s1529_s7, 4  ;;  %s1090_s18 = int_to_ptr.vmem [resolvable:$true] %s1089_s18 }
  0x13   :  { %1316 = vmatprep.mubr.msk.f32.mxu1 %vm300_vm1, %v284_v20  ;;  %1436 = vmatprep.subr.bf16.mxu1 %v1435_v24  ;;  %v49_v32 = vld [vmem:[%s1877_s0 + $0x40] sm:$0xff]  ;;  %v289_v33 = vld [vmem:[%s1878_s1 + $0x68] sm:$0xff]  ;;  %v290_v34 = vld [vmem:[%s1878_s1 + $0x70] sm:$0xff]  ;;  %s1501_s19 = scalar_lea.vmem %s1090_s18, 16  ;;  %s1505_s2 = scalar_lea.vmem %s1090_s18, 32 }
  0x14   :  { %v50_v35 = vld [vmem:[%s1877_s0 + $0x48] sm:$0xff]  ;;  %v51_v36 = vld [vmem:[%s1877_s0 + $0x50] sm:$0xff]  ;;  %v291_v37 = vld [vmem:[%s1878_s1 + $0x78] sm:$0xff]  ;;  %p1502_p0 = scmp.ne.s32.totalorder %s1090_s18, %s1501_s19  ;;  %p1506_p1 = scmp.lt.s32.totalorder %s1090_s18, %s1090_s18 }
  0x15   :  { %1285 = vmatmul.mubr.msk.f32.gmra.mrb[4].mxu0 %vm66_vm2, %v46_v27  ;;  %1438 = vmatpush3.bf16.msra.mxu1 %v1435_v24  ;;  %v52_v38 = vld [vmem:[%s1877_s0 + $0x58] sm:$0xff]  ;;  %v53_v39 = vld [vmem:[%s1877_s0 + $0x60] sm:$0xff]  ;;  %v54_v40 = vld [vmem:[%s1877_s0 + $0x68] sm:$0xff]  ;;  %p1507_p2 = scmp.lt.s32.totalorder %s1505_s2, %s1501_s19 }
  0x16   :  { %1317 = vmatmul.mubr.msk.f32.gmra.mrb[8].mxu1 %vm300_vm1, %v285_v25  ;;  %1287 = vmatprep.mubr.msk.f32.mxu0 %vm66_vm2, %v47_v28  ;;  %v55_v41 = vld [vmem:[%s1877_s0 + $0x70] sm:$0xff]  ;;  %v56_v42 = vld [vmem:[%s1877_s0 + $0x78] sm:$0xff]  ;;  %v514_v43 = vld [vmem:[%s1883_s6] sm:$0xff] }
  0x17   :  { %1319 = vmatprep.mubr.msk.f32.mxu1 %vm300_vm1, %v286_v26  ;;  %v515_v44 = vld [vmem:[%s1883_s6 + $0x8] sm:$0xff]  ;;  %v1751_v46 = vld [vmem:[%s1882_s5] ss:$0 sm:$0xff]  ;;  %v516_v51 = vld [vmem:[%s1883_s6 + $0x10] sm:$0xff]  ;;  %p1508_p3 = por %p1507_p2, %p1506_p1 }
  0x18   :  { %v1439_v45 = vpack.c.bf16 %v515_v44, %v514_v43  ;;  %v517_v52 = vld [vmem:[%s1883_s6 + $0x18] sm:$0xff]  ;;  %vm1834_vm6 = vmpackc.low %vm949_vm5, %vm949_vm5 }
  0x19   :  { %1288 = vmatmul.mubr.msk.f32.gmra.mrb[6].mxu0 %vm66_vm2, %v48_v31  ;;  %v1443_v58 = vpack.c.bf16 %v517_v52, %v516_v51  ;;  %p1509_p4 = pnand %p1508_p3, %p1502_p0 }
  0x1a   :  { %1320 = vmatmul.mubr.msk.f32.gmra.mrb[10].mxu1 %vm300_vm1, %v287_v29  ;;  %1290 = vmatprep.mubr.msk.f32.mxu0 %vm66_vm2, %v49_v32 }
  0x1b   :  { %1322 = vmatprep.mubr.msk.f32.mxu1 %vm300_vm1, %v288_v30  ;;  %1440 = vmatprep.subr.bf16.mxu1 %v1439_v45 }
  0x1d   :  { %1291 = vmatmul.mubr.msk.f32.gmra.mrb[8].mxu0 %vm66_vm2, %v50_v35 }
  0x1e   :  { %1323 = vmatmul.mubr.msk.f32.gmra.mrb[12].mxu1 %vm300_vm1, %v289_v33  ;;  %1293 = vmatprep.mubr.msk.f32.mxu0 %vm66_vm2, %v51_v36  ;;  %v1785_v33 = vld [vmem:[%s1880_s3] ss:$0 sm:$0xff] }
  0x1f   :  { %1325 = vmatprep.mubr.msk.f32.mxu1 %vm300_vm1, %v290_v34 }
  0x21   :  { %1294 = vmatmul.mubr.msk.f32.gmra.mrb[10].mxu0 %vm66_vm2, %v52_v38 }
  0x22   :  { %1326 = vmatmul.mubr.msk.f32.gmra.mrb[14].mxu1 %vm300_vm1, %v291_v37  ;;  %1296 = vmatprep.mubr.msk.f32.mxu0 %vm66_vm2, %v53_v39 }
  0x25   :  { %1297 = vmatmul.mubr.msk.f32.gmra.mrb[12].mxu0 %vm66_vm2, %v54_v40 }
  0x26   :  { %1299 = vmatprep.mubr.msk.f32.mxu0 %vm66_vm2, %v55_v41 }
  0x29   :  { %1300 = vmatmul.mubr.msk.f32.gmra.mrb[14].mxu0 %vm66_vm2, %v56_v42 }
  0xd9   :  { %v1306_v47 = vpop.f32.mrb[0].mxu1 }
  0xda   :  { %v425_v48 = vadd.f32 %v1306_v47, %v1751_v46  ;;  %v419_v49 = vpop.f32.mrb[1].mxu1 }
  0xdb   :  { %v420_v50 = vadd.f32 %v1751_v46, %v419_v49 }
  0xdc   :  { %v499_v55 = vmax.f32 %v425_v48, 0.0 }
  0xdd   :  { %v498_v53 = vmax.f32 %v420_v50, 0.0  ;;  %v1309_v54 = vpop.f32.mrb[2].mxu1 }
  0xde   :  { %v435_v56 = vadd.f32 %v1309_v54, %v1751_v46  ;;  %v429_v57 = vpop.f32.mrb[3].mxu1 }
  0xdf   :  { %v430_v59 = vadd.f32 %v1751_v46, %v429_v57  ;;  %1336 = vmatprep.mubr.msk.f32.mxu1 %vm522_vm3, %v498_v53 }
  0xe0   :  { %1337 = vmatmul.mubr.msk.f32.vlgmr.msra.gmra.mrb[16].mxu1 %vm522_vm3, %v499_v55  ;;  %v501_v62 = vmax.f32 %v435_v56, 0.0  ;;  %v1280_v1 = vpop.f32.mrb[0].mxu0 }
  0xe1   :  { %v500_v60 = vmax.f32 %v430_v59, 0.0  ;;  %1442 = vmatpush3.bf16.msra.mxu1 %v1439_v45  ;;  %v1312_v61 = vpop.f32.mrb[4].mxu1  ;;  %v181_v3 = vpop.f32.mrb[1].mxu0  ;;  %v187_v51 = vadd.f32 %v1280_v1, %v1785_v33 }
  0xe2   :  { %v445_v63 = vadd.f32 %v1312_v61, %v1751_v46  ;;  %v439_v0 = vpop.f32.mrb[5].mxu1  ;;  %1444 = vmatprep.subr.bf16.mxu1 %v1443_v58  ;;  %v182_v39 = vadd.f32 %v1785_v33, %v181_v3 }
  0xe3   :  { %v440_v2 = vadd.f32 %v1751_v46, %v439_v0  ;;  %1339 = vmatprep.mubr.msk.f32.mxu1 %vm522_vm3, %v500_v60  ;;  %v261_v56 = vmax.f32 %v187_v51, 0.0 }
  0xe4   :  { %1340 = vmatmul.mubr.msk.f32.gmra.mrb[18].mxu1 %vm522_vm3, %v501_v62  ;;  %v503_v6 = vmax.f32 %v445_v63, 0.0  ;;  %v1283_v9 = vpop.f32.mrb[2].mxu0  ;;  %v260_v48 = vmax.f32 %v182_v39, 0.0 }
  0xe5   :  { %v502_v4 = vmax.f32 %v440_v2, 0.0  ;;  %v1315_v5 = vpop.f32.mrb[6].mxu1  ;;  %1446 = vmatpush3.bf16.msra.mxu1 %v1443_v58  ;;  %v191_v11 = vpop.f32.mrb[3].mxu0 }
  0xe6   :  { %v455_v7 = vadd.f32 %v1315_v5, %v1751_v46  ;;  %v449_v8 = vpop.f32.mrb[7].mxu1  ;;  %v192_v49 = vadd.f32 %v1785_v33, %v191_v11 }
  0xe7   :  { %v450_v10 = vadd.f32 %v1751_v46, %v449_v8  ;;  %1342 = vmatprep.mubr.msk.f32.mxu1 %vm522_vm3, %v502_v4 }
  0xe8   :  { %1343 = vmatmul.mubr.msk.f32.gmra.mrb[20].mxu1 %vm522_vm3, %v503_v6  ;;  %v505_v14 = vmax.f32 %v455_v7, 0.0  ;;  %v1286_v17 = vpop.f32.mrb[4].mxu0  ;;  %v262_v54 = vmax.f32 %v192_v49, 0.0 }
  0xe9   :  { %v504_v12 = vmax.f32 %v450_v10, 0.0  ;;  %v1318_v13 = vpop.f32.mrb[8].mxu1  ;;  %v201_v19 = vpop.f32.mrb[5].mxu0  ;;  %v207_v60 = vadd.f32 %v1286_v17, %v1785_v33 }
  0xea   :  { %v465_v15 = vadd.f32 %v1318_v13, %v1751_v46  ;;  %v459_v16 = vpop.f32.mrb[9].mxu1  ;;  %v202_v55 = vadd.f32 %v1785_v33, %v201_v19  ;;  %v1525_v19 = vmov 0.0|0.0  }
  0xeb   :  { %v460_v18 = vadd.f32 %v1751_v46, %v459_v16  ;;  %1345 = vmatprep.mubr.msk.f32.mxu1 %vm522_vm3, %v504_v12  ;;  %v265_v63 = vmax.f32 %v207_v60, 0.0  ;;  %1447 = vmatprep.subr.bf16.mxu0 %v1525_v19 }
  0xec   :  { %1346 = vmatmul.mubr.msk.f32.gmra.mrb[22].mxu1 %vm522_vm3, %v505_v14  ;;  %v507_v22 = vmax.f32 %v465_v15, 0.0  ;;  %v1289_v25 = vpop.f32.mrb[6].mxu0  ;;  %v264_v61 = vmax.f32 %v202_v55, 0.0 }
  0xed   :  { %v506_v20 = vmax.f32 %v460_v18, 0.0  ;;  %v1321_v21 = vpop.f32.mrb[10].mxu1  ;;  %v211_v27 = vpop.f32.mrb[7].mxu0  ;;  %v217_v0 = vadd.f32 %v1289_v25, %v1785_v33 }
  0xee   :  { %v475_v23 = vadd.f32 %v1321_v21, %v1751_v46  ;;  %v469_v24 = vpop.f32.mrb[11].mxu1  ;;  %v212_v62 = vadd.f32 %v1785_v33, %v211_v27  ;;  %v1071_v21 = vld [vmem:[#allocation2] sm:$0x1] }
  0xef   :  { %v470_v26 = vadd.f32 %v1751_v46, %v469_v24  ;;  %1348 = vmatprep.mubr.msk.f32.mxu1 %vm522_vm3, %v506_v20  ;;  %v267_v3 = vmax.f32 %v217_v0, 0.0  ;;  %v1527_v20 = vmov 0.0  }
  0xf0   :  { %1349 = vmatmul.mubr.msk.f32.gmra.mrb[24].mxu1 %vm522_vm3, %v507_v22  ;;  %v509_v30 = vmax.f32 %v475_v23, 0.0  ;;  %v1292_v34 = vpop.f32.mrb[8].mxu0  ;;  %v266_v1 = vmax.f32 %v212_v62, 0.0  ;;  %1424 = vmatprep.mubr.msk.f32.mxu0 %vm1526_vm4, %v1527_v20  ;;  %v1528_v22 = vmov 0   ;;  %v1164_v23 = vld [vmem:[%s1885_s8] ss:$0 sm:$0xff] }
  0xf1   :  { %v508_v28 = vmax.f32 %v470_v26, 0.0  ;;  %v1324_v29 = vpop.f32.mrb[12].mxu1  ;;  %v221_v36 = vpop.f32.mrb[9].mxu0  ;;  %v227_v4 = vadd.f32 %v1292_v34, %v1785_v33  ;;  %1500 = vset.pattern.permute.xlu0 %v1528_v22 }
  0xf2   :  { %v485_v31 = vadd.f32 %v1324_v29, %v1751_v46  ;;  %v479_v32 = vpop.f32.mrb[13].mxu1  ;;  %v222_v2 = vadd.f32 %v1785_v33, %v221_v36  ;;  %1074 = vperm.xlu0 %1500, %v1071_v21  }
  0xf3   :  { %v480_v35 = vadd.f32 %v1751_v46, %v479_v32  ;;  %1351 = vmatprep.mubr.msk.f32.mxu1 %vm522_vm3, %v508_v28  ;;  %v269_v7 = vmax.f32 %v227_v4, 0.0 }
  0xf4   :  { %1352 = vmatmul.mubr.msk.f32.gmra.mrb[26].mxu1 %vm522_vm3, %v509_v30  ;;  %v511_v40 = vmax.f32 %v485_v31, 0.0  ;;  %v1295_v43 = vpop.f32.mrb[10].mxu0  ;;  %v268_v5 = vmax.f32 %v222_v2, 0.0 }
  0xf5   :  { %v510_v37 = vmax.f32 %v480_v35, 0.0  ;;  %v1327_v38 = vpop.f32.mrb[14].mxu1  ;;  %v231_v45 = vpop.f32.mrb[11].mxu0  ;;  %v237_v8 = vadd.f32 %v1295_v43, %v1785_v33 }
  0xf6   :  { %v495_v41 = vadd.f32 %v1327_v38, %v1751_v46  ;;  %v489_v42 = vpop.f32.mrb[15].mxu1  ;;  %v232_v6 = vadd.f32 %v1785_v33, %v231_v45 }
  0xf7   :  { %v490_v44 = vadd.f32 %v1751_v46, %v489_v42  ;;  %1354 = vmatprep.mubr.msk.f32.mxu1 %vm522_vm3, %v510_v37  ;;  %v197_v46 = vadd.f32 %v1283_v9, %v1785_v33  ;;  %v271_v11 = vmax.f32 %v237_v8, 0.0 }
  0xf8   :  { %1355 = vmatmul.mubr.msk.f32.gmra.mrb[28].mxu1 %vm522_vm3, %v511_v40  ;;  %v513_v50 = vmax.f32 %v495_v41, 0.0  ;;  %v1298_v52 = vpop.f32.mrb[12].mxu0  ;;  %v270_v9 = vmax.f32 %v232_v6, 0.0 }
  0xf9   :  { %v512_v47 = vmax.f32 %v490_v44, 0.0  ;;  %v241_v53 = vpop.f32.mrb[13].mxu0  ;;  %v263_v59 = vmax.f32 %v197_v46, 0.0  ;;  %v247_v12 = vadd.f32 %v1298_v52, %v1785_v33 }
  0xfa   :  { %v242_v10 = vadd.f32 %v1785_v33, %v241_v53 }
  0xfb   :  { %1357 = vmatprep.mubr.msk.f32.mxu1 %vm522_vm3, %v512_v47  ;;  %v273_v15 = vmax.f32 %v247_v12, 0.0 }
  0xfc   :  { %1358 = vmatmul.mubr.msk.f32.gmra.mrb[30].mxu1 %vm522_vm3, %v513_v50  ;;  %v1301_v57 = vpop.f32.mrb[14].mxu0  ;;  %v272_v13 = vmax.f32 %v242_v10, 0.0 }
  0xfd   :  { %1368 = vmatprep.mubr.msk.f32.mxu1 %vm522_vm3, %v260_v48  ;;  %v251_v58 = vpop.f32.mrb[15].mxu0  ;;  %v257_v16 = vadd.f32 %v1301_v57, %v1785_v33 }
  0xfe   :  { %v252_v14 = vadd.f32 %v1785_v33, %v251_v58 }
  0xff   :  { %v275_v18 = vmax.f32 %v257_v16, 0.0 }
 0x100   :  { %1369 = vmatmul.mubr.msk.f32.vlgmr.msra.gmra.mrb[16].mxu1 %vm522_vm3, %v261_v56  ;;  %v274_v17 = vmax.f32 %v252_v14, 0.0 }
 0x101   :  { %1371 = vmatprep.mubr.msk.f32.mxu1 %vm522_vm3, %v262_v54 }
 0x104   :  { %1372 = vmatmul.mubr.msk.f32.gmra.mrb[18].mxu1 %vm522_vm3, %v263_v59 }
 0x105   :  { %1374 = vmatprep.mubr.msk.f32.mxu1 %vm522_vm3, %v264_v61 }
 0x108   :  { %1375 = vmatmul.mubr.msk.f32.gmra.mrb[20].mxu1 %vm522_vm3, %v265_v63 }
 0x109   :  { %1377 = vmatprep.mubr.msk.f32.mxu1 %vm522_vm3, %v266_v1 }
 0x10c   :  { %1378 = vmatmul.mubr.msk.f32.gmra.mrb[22].mxu1 %vm522_vm3, %v267_v3 }
 0x10d   :  { %1380 = vmatprep.mubr.msk.f32.mxu1 %vm522_vm3, %v268_v5 }
 0x110   :  { %1381 = vmatmul.mubr.msk.f32.gmra.mrb[24].mxu1 %vm522_vm3, %v269_v7 }
 0x111   :  { %1383 = vmatprep.mubr.msk.f32.mxu1 %vm522_vm3, %v270_v9 }
 0x114   :  { %1384 = vmatmul.mubr.msk.f32.gmra.mrb[26].mxu1 %vm522_vm3, %v271_v11 }
 0x115   :  { %1386 = vmatprep.mubr.msk.f32.mxu1 %vm522_vm3, %v272_v13 }
 0x118   :  { %1387 = vmatmul.mubr.msk.f32.gmra.mrb[28].mxu1 %vm522_vm3, %v273_v15 }
 0x119   :  { %1389 = vmatprep.mubr.msk.f32.mxu1 %vm522_vm3, %v274_v17  ;;  %v948_v17 = vld [vmem:[%s1886_s9] sm:$0xff] }
 0x11c   :  { %1390 = vmatmul.mubr.msk.f32.gmra.mrb[30].mxu1 %vm522_vm3, %v275_v18  ;;  %v1077_v18 = vlaneseq }
 0x11e   :  { %v1078_v20 = vshrl.u32 %v1077_v18, 7 }
 0x120   :  { %v1079_v21 = vsub.s32 0, %v1078_v20 }
 0x171   :  { %v1075_v22 = vpop.permute.xlu0 %1074 }
 0x1d3   :  { %v1370_v24 = vpop.f32.mrb[16].mxu1 }
 0x1d4   :  { %v917_v25 = vadd.f32 %v1370_v24, %v1164_v23  ;;  %v830_v26 = vpop.f32.mrb[17].mxu1 }
 0x1d5   :  { %v916_v27 = vadd.f32 %v1164_v23, %v830_v26 }
 0x1d6   :  { %v933_v28 = vmax.f32 %v917_v25, 0.0 }
 0x1d7   :  { %v932_v29 = vmax.f32 %v916_v27, 0.0  ;;  %v1373_v30 = vpop.f32.mrb[18].mxu1 }
 0x1d8   :  { %v919_v31 = vadd.f32 %v1373_v30, %v1164_v23  ;;  %v840_v32 = vpop.f32.mrb[19].mxu1 }
 0x1d9   :  { %v1448_v34 = vpack.c.bf16 %v933_v28, %v932_v29  ;;  %v918_v35 = vadd.f32 %v1164_v23, %v840_v32 }
 0x1da   :  { %v935_v36 = vmax.f32 %v919_v31, 0.0 }
 0x1db   :  { %v934_v37 = vmax.f32 %v918_v35, 0.0  ;;  %v1376_v38 = vpop.f32.mrb[20].mxu1  ;;  %1450 = vmatpush3.bf16.xpose.msk.msra.mxu0 %vm1834_vm6, %v1448_v34 }
 0x1dc   :  { %v921_v39 = vadd.f32 %v1376_v38, %v1164_v23  ;;  %v850_v40 = vpop.f32.mrb[21].mxu1  ;;  %1451 = vmatprep.subr.bf16.mxu0 %v1525_v19 }
 0x1dd   :  { %v1452_v41 = vpack.c.bf16 %v935_v36, %v934_v37  ;;  %v920_v42 = vadd.f32 %v1164_v23, %v850_v40 }
 0x1de   :  { %v937_v43 = vmax.f32 %v921_v39, 0.0 }
 0x1df   :  { %v936_v44 = vmax.f32 %v920_v42, 0.0  ;;  %v1379_v45 = vpop.f32.mrb[22].mxu1 }
 0x1e0   :  { %v923_v47 = vadd.f32 %v1379_v45, %v1164_v23  ;;  %v860_v48 = vpop.f32.mrb[23].mxu1 }
 0x1e1   :  { %v1456_v49 = vpack.c.bf16 %v937_v43, %v936_v44  ;;  %v922_v50 = vadd.f32 %v1164_v23, %v860_v48 }
 0x1e2   :  { %v939_v51 = vmax.f32 %v923_v47, 0.0 }
 0x1e3   :  { %v938_v52 = vmax.f32 %v922_v50, 0.0  ;;  %v1382_v53 = vpop.f32.mrb[24].mxu1  ;;  %1454 = vmatpush3.bf16.xpose.msk.msra.mxu0 %vm1834_vm6, %v1452_v41 }
 0x1e4   :  { %v925_v46 = vadd.f32 %v1382_v53, %v1164_v23  ;;  %v870_v54 = vpop.f32.mrb[25].mxu1  ;;  %1455 = vmatprep.subr.bf16.mxu0 %v1525_v19 }
 0x1e5   :  { %v1460_v55 = vpack.c.bf16 %v939_v51, %v938_v52  ;;  %v924_v56 = vadd.f32 %v1164_v23, %v870_v54 }
 0x1e6   :  { %v941_v57 = vmax.f32 %v925_v46, 0.0 }
 0x1e7   :  { %v940_v58 = vmax.f32 %v924_v56, 0.0  ;;  %v1385_v59 = vpop.f32.mrb[26].mxu1 }
 0x1e8   :  { %v927_v60 = vadd.f32 %v1385_v59, %v1164_v23  ;;  %v880_v61 = vpop.f32.mrb[27].mxu1 }
 0x1e9   :  { %v1464_v62 = vpack.c.bf16 %v941_v57, %v940_v58  ;;  %v926_v63 = vadd.f32 %v1164_v23, %v880_v61 }
 0x1ea   :  { %v943_v0 = vmax.f32 %v927_v60, 0.0 }
 0x1eb   :  { %v942_v1 = vmax.f32 %v926_v63, 0.0  ;;  %v1388_v2 = vpop.f32.mrb[28].mxu1  ;;  %1458 = vmatpush3.bf16.xpose.msk.msra.mxu0 %vm1834_vm6, %v1456_v49 }
 0x1ec   :  { %v929_v3 = vadd.f32 %v1388_v2, %v1164_v23  ;;  %v890_v4 = vpop.f32.mrb[29].mxu1  ;;  %1459 = vmatprep.subr.bf16.mxu0 %v1525_v19 }
 0x1ed   :  { %v1468_v5 = vpack.c.bf16 %v943_v0, %v942_v1  ;;  %v928_v6 = vadd.f32 %v1164_v23, %v890_v4 }
 0x1ee   :  { %v945_v7 = vmax.f32 %v929_v3, 0.0 }
 0x1ef   :  { %v944_v8 = vmax.f32 %v928_v6, 0.0  ;;  %v1391_v9 = vpop.f32.mrb[30].mxu1 }
 0x1f0   :  { %v931_v10 = vadd.f32 %v1391_v9, %v1164_v23  ;;  %v900_v11 = vpop.f32.mrb[31].mxu1 }
 0x1f1   :  { %v1472_v12 = vpack.c.bf16 %v945_v7, %v944_v8  ;;  %v930_v13 = vadd.f32 %v1164_v23, %v900_v11  ;;  %v1080_v23 = vrot.slane %v1075_v22, %v1079_v21 }
 0x1f2   :  { %v947_v14 = vmax.f32 %v931_v10, 0.0 }
 0x1f3   :  { %v946_v15 = vmax.f32 %v930_v13, 0.0  ;;  %1462 = vmatpush3.bf16.xpose.msk.msra.mxu0 %vm1834_vm6, %v1460_v55 }
 0x1f4   :  { %1463 = vmatprep.subr.bf16.mxu0 %v1525_v19 }
 0x1f5   :  { %v1476_v16 = vpack.c.bf16 %v947_v14, %v946_v15 }
 0x1fb   :  { %1466 = vmatpush3.bf16.xpose.msk.msra.mxu0 %vm1834_vm6, %v1464_v62 }
 0x1fc   :  { %1467 = vmatprep.subr.bf16.mxu0 %v1525_v19 }
 0x203   :  { %1470 = vmatpush3.bf16.xpose.msk.msra.mxu0 %vm1834_vm6, %v1468_v5 }
 0x204   :  { %1471 = vmatprep.subr.bf16.mxu0 %v1525_v19 }
 0x20b   :  { %1474 = vmatpush3.bf16.xpose.msk.msra.mxu0 %vm1834_vm6, %v1472_v12 }
 0x20c   :  { %1475 = vmatprep.subr.bf16.mxu0 %v1525_v19 }
 0x213   :  { %1478 = vmatpush3.bf16.xpose.msk.msra.mxu0 %vm1834_vm6, %v1476_v16 }
 0x21a   :  { %1425 = vmatmul.mubr.msk.f32.vlgmr.msra.gmra.mrb[16].mxu0 %vm949_vm5, %v948_v17 }
 0x2ed   :  { %v1067_v24 = vpop.f32.mrb[16].mxu0 }
 0x2ee   :  { %v1081_v25 = vadd.f32 %v1080_v23, %v1067_v24  ;;  %v1426_v26 = vpop.f32.mrb[17].mxu0 }
 0x2f0   :  { %1082 = vst [vmem:[#allocation3] sm:$0x1] %v1081_v25 }
 0x2f1   :  { %1512 = shalt.err (!%p1509_p4)
}
 0x2f2   :  { %s1513_s21 = scalar_lea.hbm %s1888_s11, 16 }
 0x2f3   :  { %p1514_p5 = scmp.ne.s32.totalorder %s1888_s11, %s1513_s21  ;;  %p1517_p6 = scmp.lt.u32.totalorder %s1513_s21, %s1888_s11 }
 0x2f5   :  { %p1519_p7 = pnand %p1517_p6, %p1514_p5 }
 0x2f7   :  { %1522 = shalt.err (!%p1519_p7)
}
 0x2f8   :  { %1092 = dma.vmem_to_hbm [thread:$0]  %s1090_s18, 16, %s1888_s11, [#allocation4]  }
 0x2f9   :  { %1523 = dma.done.wait [#allocation4], 16  }
 0x2fa   :  { %1524 = vsyncadd [#allocation4], 4294967280 }
 0x2fb   :  { %1096 = vsyncpa [#allocation4], 1 }

</bundles_post_ra>
